<compile_context>
chip_gen: v5e
topology: v5e:2x2
jax: 0.10.0
libtpu: 0.0.40
codegen_flags: <defaults>
</compile_context>

<pallas_src>
import functools

import jax
import jax.numpy as jnp
from jax.experimental import pallas as pl
from jax.experimental.pallas import tpu as pltpu

HIDDEN = 256
LANE = 128


def _round_up(x, m):
    return ((x + m - 1) // m) * m


def _actor_kernel(obs_ref, w1_ref, b1_ref, w2_ref, b2_ref, w3_ref, b3_ref,
                  ab_ref, out_ref):
    # obs tile: (TILE_B, obs_dim) f32; weights: bf16; biases / bound: f32.
    x = obs_ref[...].astype(jnp.bfloat16)

    # fc1 + relu (bf16 MXU operands, f32 accumulation / elementwise)
    h1 = jnp.dot(x, w1_ref[...], preferred_element_type=jnp.float32) + b1_ref[...]
    h1 = jnp.maximum(h1, 0.0)

    # fc2 + relu
    h2 = jnp.dot(h1.astype(jnp.bfloat16), w2_ref[...],
                 preferred_element_type=jnp.float32) + b2_ref[...]
    h2 = jnp.maximum(h2, 0.0)

    # fc3 (lane-padded to 128 output columns) + tanh + action-bound scaling
    a = jnp.dot(h2.astype(jnp.bfloat16), w3_ref[...],
                preferred_element_type=jnp.float32) + b3_ref[...]
    out_ref[...] = (jnp.tanh(a) * ab_ref[...]).astype(out_ref.dtype)


@functools.partial(jax.jit, static_argnames=("tile_b",))
def actor_forward(obs, params, action_bound, *, tile_b=512):
    """Pallas implementation of ActorModel.forward."""
    w1, b1, w2, b2, w3, b3 = params
    obs = obs.astype(jnp.float32)
    B, obs_dim = obs.shape
    act_dim = w3.shape[1]

    # --- lane-dense fc3 output: pad act_dim up to a multiple of 128 lanes ---
    out_pad = _round_up(max(act_dim, LANE), LANE)
    w3p = jnp.zeros((HIDDEN, out_pad), jnp.float32).at[:, :act_dim].set(w3)
    b3p = jnp.zeros((1, out_pad), jnp.float32).at[:, :act_dim].set(b3)
    abp = jnp.zeros((1, out_pad), jnp.float32).at[:, :act_dim].set(
        action_bound.reshape(1, -1).astype(jnp.float32))

    # --- batch tiling: multiple of 8 sublanes, pad batch to a tile multiple ---
    tb = min(_round_up(tile_b, 8), _round_up(B, 8))
    b_pad = _round_up(B, tb)
    if b_pad != B:
        obs = jnp.pad(obs, ((0, b_pad - B), (0, 0)))

    # bf16 weights (native MXU operand dtype, half the DMA bytes).
    w1b = w1.astype(jnp.bfloat16)
    w2b = w2.astype(jnp.bfloat16)
    w3b = w3p.astype(jnp.bfloat16)
    b1f = b1.astype(jnp.float32)
    b2f = b2.astype(jnp.float32)

    pinned = lambda a: pl.BlockSpec(a.shape, lambda i: (0, 0))  # VMEM-resident

    out = pl.pallas_call(
        _actor_kernel,
        out_shape=jax.ShapeDtypeStruct((b_pad, out_pad), jnp.float32),
        grid=(b_pad // tb,),
        in_specs=[
            pl.BlockSpec((tb, obs_dim), lambda i: (i, 0)),   # obs tile
            pinned(w1b), pinned(b1f),
            pinned(w2b), pinned(b2f),
            pinned(w3b), pinned(b3p),
            pinned(abp),
        ],
        out_specs=pl.BlockSpec((tb, out_pad), lambda i: (i, 0)),
        compiler_params=pltpu.CompilerParams(
            dimension_semantics=("parallel",)),
    )(obs, w1b, b1f, w2b, b2f, w3b, b3p, abp)

    return out[:B, :act_dim]


def init_params(key, obs_dim, act_dim, hidden_dim=HIDDEN):
    """Deterministic init matching nn.Linear default (uniform +/- 1/sqrt(fan_in))."""
    def linear(key, fan_in, fan_out):
        kw, kb = jax.random.split(key)
        bound = 1.0 / jnp.sqrt(fan_in)
        w = jax.random.uniform(kw, (fan_in, fan_out), jnp.float32, -bound, bound)
        b = jax.random.uniform(kb, (1, fan_out), jnp.float32, -bound, bound)
        return w, b

    k1, k2, k3 = jax.random.split(key, 3)
    w1, b1 = linear(k1, obs_dim, hidden_dim)
    w2, b2 = linear(k2, hidden_dim, hidden_dim)
    w3, b3 = linear(k3, hidden_dim, act_dim)
    return (w1, b1, w2, b2, w3, b3)


def actor_ref(obs, params, action_bound):
    """Pure-JAX f32 reference for correctness check."""
    w1, b1, w2, b2, w3, b3 = params
    h1 = jnp.maximum(obs @ w1 + b1, 0.0)
    h2 = jnp.maximum(h1 @ w2 + b2, 0.0)
    return jnp.tanh(h2 @ w3 + b3) * action_bound.reshape(1, -1)


if __name__ == "__main__":
    obs_dim, act_dim, batch = 16, 8, 8

    key = jax.random.PRNGKey(0)
    kp, ko, kb = jax.random.split(key, 3)
    params = init_params(kp, obs_dim, act_dim)
    obs = jax.random.normal(ko, (batch, obs_dim), jnp.float32)
    action_bound = jax.random.uniform(kb, (act_dim,), jnp.float32, 0.5, 2.0)

    act = actor_forward(obs, params, action_bound)
    act = jax.block_until_ready(act)

    act_r = actor_ref(obs, params, action_bound)
    assert act.shape == (batch, act_dim)
    # bf16 MXU operands (f32 accumulation) -> loosened tolerance vs f32 ref.
    assert jnp.allclose(act, act_r, atol=3e-2, rtol=3e-2), (
        float(jnp.max(jnp.abs(act - act_r))))
    print("KERNEL_OK")
</pallas_src>

<mosaic_0001>
module attributes {stable_mosaic.version = 11 : i64} {
  func.func @_actor_kernel(%arg0: i32, %arg1: memref<8x16xf32, #tpu.memory_space<vmem>>, %arg2: memref<16x256xbf16, #tpu.memory_space<vmem>>, %arg3: memref<1x256xf32, #tpu.memory_space<vmem>>, %arg4: memref<256x256xbf16, #tpu.memory_space<vmem>>, %arg5: memref<1x256xf32, #tpu.memory_space<vmem>>, %arg6: memref<256x128xbf16, #tpu.memory_space<vmem>>, %arg7: memref<1x128xf32, #tpu.memory_space<vmem>>, %arg8: memref<1x128xf32, #tpu.memory_space<vmem>>, %arg9: memref<8x128xf32, #tpu.memory_space<vmem>>) attributes {dimension_semantics = [#tpu.dimension_semantics<parallel>], iteration_bounds = array<i64: 1>, scalar_prefetch = 0 : i64, scratch_operands = 0 : i64, tpu.core_type = #tpu.core_type<tc>, window_params = [{transform_indices = @transform_0, window_bounds = array<i64: 8, 16>}, {pipeline_mode = #tpu.pipeline_mode<synchronous>, transform_indices = @transform_1, window_bounds = array<i64: 16, 256>}, {pipeline_mode = #tpu.pipeline_mode<synchronous>, transform_indices = @transform_2, window_bounds = array<i64: 1, 256>}, {pipeline_mode = #tpu.pipeline_mode<synchronous>, transform_indices = @transform_3, window_bounds = array<i64: 256, 256>}, {pipeline_mode = #tpu.pipeline_mode<synchronous>, transform_indices = @transform_4, window_bounds = array<i64: 1, 256>}, {pipeline_mode = #tpu.pipeline_mode<synchronous>, transform_indices = @transform_5, window_bounds = array<i64: 256, 128>}, {pipeline_mode = #tpu.pipeline_mode<synchronous>, transform_indices = @transform_6, window_bounds = array<i64: 1, 128>}, {pipeline_mode = #tpu.pipeline_mode<synchronous>, transform_indices = @transform_7, window_bounds = array<i64: 1, 128>}, {transform_indices = @transform_8, window_bounds = array<i64: 8, 128>}]} {
    %c0 = arith.constant 0 : index
    %c0_0 = arith.constant 0 : index
    %0 = vector.load %arg1[%c0, %c0_0] : memref<8x16xf32, #tpu.memory_space<vmem>>, vector<8x16xf32>
    %1 = arith.truncf %0 : vector<8x16xf32> to vector<8x16xbf16>
    %c0_1 = arith.constant 0 : index
    %c0_2 = arith.constant 0 : index
    %2 = vector.load %arg2[%c0_1, %c0_2] : memref<16x256xbf16, #tpu.memory_space<vmem>>, vector<16x256xbf16>
    %cst = arith.constant dense<0.000000e+00> : vector<8x256xf32>
    %3 = tpu.matmul %1, %2, %cst {dimension_numbers = #tpu.dot_dimension_numbers<[1], [0], [0], [1], [0, 0, 1, 1], [], []>} : vector<8x16xbf16>, vector<16x256xbf16>, vector<8x256xf32> -> vector<8x256xf32>
    %c0_3 = arith.constant 0 : index
    %c0_4 = arith.constant 0 : index
    %4 = vector.load %arg3[%c0_3, %c0_4] : memref<1x256xf32, #tpu.memory_space<vmem>>, vector<1x256xf32>
    %5 = vector.broadcast %4 : vector<1x256xf32> to vector<8x256xf32>
    %6 = arith.addf %3, %5 : vector<8x256xf32>
    %cst_5 = arith.constant 0.000000e+00 : f32
    %7 = vector.broadcast %cst_5 : f32 to vector<8x256xf32>
    %8 = arith.maximumf %6, %7 : vector<8x256xf32>
    %9 = arith.truncf %8 : vector<8x256xf32> to vector<8x256xbf16>
    %c0_6 = arith.constant 0 : index
    %c0_7 = arith.constant 0 : index
    %10 = vector.load %arg4[%c0_6, %c0_7] : memref<256x256xbf16, #tpu.memory_space<vmem>>, vector<256x256xbf16>
    %cst_8 = arith.constant dense<0.000000e+00> : vector<8x256xf32>
    %11 = tpu.matmul %9, %10, %cst_8 {dimension_numbers = #tpu.dot_dimension_numbers<[1], [0], [0], [1], [0, 0, 1, 1], [], []>} : vector<8x256xbf16>, vector<256x256xbf16>, vector<8x256xf32> -> vector<8x256xf32>
    %c0_9 = arith.constant 0 : index
    %c0_10 = arith.constant 0 : index
    %12 = vector.load %arg5[%c0_9, %c0_10] : memref<1x256xf32, #tpu.memory_space<vmem>>, vector<1x256xf32>
    %13 = vector.broadcast %12 : vector<1x256xf32> to vector<8x256xf32>
    %14 = arith.addf %11, %13 : vector<8x256xf32>
    %cst_11 = arith.constant 0.000000e+00 : f32
    %15 = vector.broadcast %cst_11 : f32 to vector<8x256xf32>
    %16 = arith.maximumf %14, %15 : vector<8x256xf32>
    %17 = arith.truncf %16 : vector<8x256xf32> to vector<8x256xbf16>
    %c0_12 = arith.constant 0 : index
    %c0_13 = arith.constant 0 : index
    %18 = vector.load %arg6[%c0_12, %c0_13] : memref<256x128xbf16, #tpu.memory_space<vmem>>, vector<256x128xbf16>
    %cst_14 = arith.constant dense<0.000000e+00> : vector<8x128xf32>
    %19 = tpu.matmul %17, %18, %cst_14 {dimension_numbers = #tpu.dot_dimension_numbers<[1], [0], [0], [1], [0, 0, 1, 1], [], []>} : vector<8x256xbf16>, vector<256x128xbf16>, vector<8x128xf32> -> vector<8x128xf32>
    %c0_15 = arith.constant 0 : index
    %c0_16 = arith.constant 0 : index
    %20 = vector.load %arg7[%c0_15, %c0_16] : memref<1x128xf32, #tpu.memory_space<vmem>>, vector<1x128xf32>
    %21 = vector.broadcast %20 : vector<1x128xf32> to vector<8x128xf32>
    %22 = arith.addf %19, %21 : vector<8x128xf32>
    %23 = math.tanh %22 : vector<8x128xf32>
    %c0_17 = arith.constant 0 : index
    %c0_18 = arith.constant 0 : index
    %24 = vector.load %arg8[%c0_17, %c0_18] : memref<1x128xf32, #tpu.memory_space<vmem>>, vector<1x128xf32>
    %25 = vector.broadcast %24 : vector<1x128xf32> to vector<8x128xf32>
    %26 = arith.mulf %23, %25 : vector<8x128xf32>
    %c0_19 = arith.constant 0 : index
    %c0_20 = arith.constant 0 : index
    %27 = vector.load %arg9[%c0_19, %c0_20] : memref<8x128xf32, #tpu.memory_space<vmem>>, vector<8x128xf32>
    tpu.vector_store %arg9[%c0_19, %c0_20], %26 {strides = array<i32>} : memref<8x128xf32, #tpu.memory_space<vmem>>, vector<8x128xf32>,
    return
  }
  func.func @transform_0(%arg0: i32) -> (i32, i32) {
    %c0_i32 = arith.constant 0 : i32
    %c0_i32_0 = arith.constant 0 : i32
    return %arg0, %c0_i32 : i32, i32
  }
  func.func @transform_1(%arg0: i32) -> (i32, i32) {
    %c0_i32 = arith.constant 0 : i32
    %c0_i32_0 = arith.constant 0 : i32
    %c0_i32_1 = arith.constant 0 : i32
    return %c0_i32, %c0_i32_0 : i32, i32
  }
  func.func @transform_2(%arg0: i32) -> (i32, i32) {
    %c0_i32 = arith.constant 0 : i32
    %c0_i32_0 = arith.constant 0 : i32
    %c0_i32_1 = arith.constant 0 : i32
    return %c0_i32, %c0_i32_0 : i32, i32
  }
  func.func @transform_3(%arg0: i32) -> (i32, i32) {
    %c0_i32 = arith.constant 0 : i32
    %c0_i32_0 = arith.constant 0 : i32
    %c0_i32_1 = arith.constant 0 : i32
    return %c0_i32, %c0_i32_0 : i32, i32
  }
  func.func @transform_4(%arg0: i32) -> (i32, i32) {
    %c0_i32 = arith.constant 0 : i32
    %c0_i32_0 = arith.constant 0 : i32
    %c0_i32_1 = arith.constant 0 : i32
    return %c0_i32, %c0_i32_0 : i32, i32
  }
  func.func @transform_5(%arg0: i32) -> (i32, i32) {
    %c0_i32 = arith.constant 0 : i32
    %c0_i32_0 = arith.constant 0 : i32
    %c0_i32_1 = arith.constant 0 : i32
    return %c0_i32, %c0_i32_0 : i32, i32
  }
  func.func @transform_6(%arg0: i32) -> (i32, i32) {
    %c0_i32 = arith.constant 0 : i32
    %c0_i32_0 = arith.constant 0 : i32
    %c0_i32_1 = arith.constant 0 : i32
    return %c0_i32, %c0_i32_0 : i32, i32
  }
  func.func @transform_7(%arg0: i32) -> (i32, i32) {
    %c0_i32 = arith.constant 0 : i32
    %c0_i32_0 = arith.constant 0 : i32
    %c0_i32_1 = arith.constant 0 : i32
    return %c0_i32, %c0_i32_0 : i32, i32
  }
  func.func @transform_8(%arg0: i32) -> (i32, i32) {
    %c0_i32 = arith.constant 0 : i32
    %c0_i32_0 = arith.constant 0 : i32
    return %arg0, %c0_i32 : i32, i32
  }
}

</mosaic_0001>

<bundles_post_ra>
// kernel: actor_forward.1
= control target key start
LH: loop header
LB: loop body
LE: loop exit
PB: predicated region body
PF: predicated region fallthrough
CT: control target
= control target key end

     0   :  { %vm51_vm0 = vcmask 130048   ;;  %s1121_s0 = inlined_call_operand.vmem [shape: f32[8,16], index: 0, kind: input, shape index: {}]   ;;  %s1122_s1 = inlined_call_operand.vmem [shape: bf16[16,256], index: 1, kind: input, shape index: {}]   ;;  %s1123_s2 = inlined_call_operand.vmem [shape: f32[1,256], index: 2, kind: input, shape index: {}]   ;;  %s1124_s3 = inlined_call_operand.vmem [shape: bf16[256,256], index: 3, kind: input, shape index: {}]   ;;  %s1125_s4 = inlined_call_operand.vmem [shape: f32[1,256], index: 4, kind: input, shape index: {}]   ;;  %s1126_s5 = inlined_call_operand.vmem [shape: bf16[256,128], index: 5, kind: input, shape index: {}]   ;;  %s1127_s6 = inlined_call_operand.vmem [shape: f32[1,128], index: 6, kind: input, shape index: {}]   ;;  %s1128_s7 = inlined_call_operand.vmem [shape: f32[1,128], index: 7, kind: input, shape index: {}]   ;;  %s1129_s8 = inlined_call_operand.hbm [shape: f32[8,128], index: 8, kind: output, shape index: {}]  }
   0x1   :  { %v522_v0 = vld [vmem:[%s1122_s1] sm:$0xf]  ;;  %v723_v1 = vld [vmem:[%s1122_s1 + $0x4] sm:$0xf0]  ;;  %v722_v2 = vld [vmem:[%s1122_s1 + $0x4] sm:$0xf] }
   0x2   :  { %v523_v3 = vor.u32 %v723_v1, %v522_v0  ;;  %v524_v4 = vld [vmem:[%s1122_s1 + $0x8] sm:$0xf0]  ;;  %v31_v5 = vld [vmem:[%s1121_s0] sm:$0xff]  ;;  %v588_v6 = vld [vmem:[%s1124_s3 + $0x70] sm:$0xf] }
   0x3   :  { %v527_v7 = vor.u32 %v722_v2, %v524_v4  ;;  %v32_v8 = vpack.c.bf16 %v31_v5, %v31_v5  ;;  %v739_v9 = vld [vmem:[%s1124_s3 + $0x74] sm:$0xf0]  ;;  %v652_v10 = vld [vmem:[%s1124_s3 + $0xf0] sm:$0xf]  ;;  %v738_v14 = vld [vmem:[%s1124_s3 + $0x74] sm:$0xf] }
   0x4   :  { %v755_v11 = vld [vmem:[%s1124_s3 + $0xf4] sm:$0xf0]  ;;  %62 = vmatpush.bf16.msra.mxu0 %v523_v3  ;;  %v589_v12 = vor.u32 %v739_v9, %v588_v6  ;;  %v590_v15 = vld [vmem:[%s1124_s3 + $0x78] sm:$0xf0]  ;;  %v754_v16 = vld [vmem:[%s1124_s3 + $0xf4] sm:$0xf] }
   0x5   :  { %v653_v13 = vor.u32 %v755_v11, %v652_v10  ;;  %75 = vmatpush.bf16.msra.mxu1 %v527_v7  ;;  %v593_v17 = vor.u32 %v738_v14, %v590_v15  ;;  %v654_v18 = vld [vmem:[%s1124_s3 + $0xf8] sm:$0xf0]  ;;  %v580_v19 = vld [vmem:[%s1124_s3 + $0x60] sm:$0xf]  ;;  %v737_v20 = vld [vmem:[%s1124_s3 + $0x64] sm:$0xf0] }
   0x6   :  { %283 = vmatpush.bf16.msra.mxu2 %v589_v12  ;;  %v657_v21 = vor.u32 %v754_v16, %v654_v18  ;;  %v581_v22 = vor.u32 %v737_v20, %v580_v19  ;;  %v644_v23 = vld [vmem:[%s1124_s3 + $0xe0] sm:$0xf]  ;;  %v753_v24 = vld [vmem:[%s1124_s3 + $0xe4] sm:$0xf0]  ;;  %v736_v25 = vld [vmem:[%s1124_s3 + $0x64] sm:$0xf] }
   0x7   :  { %296 = vmatpush.bf16.msra.mxu3 %v653_v13  ;;  %528 = vmatmul.msk.bf16.vlgmr.msra.gmra.mxu0 %vm51_vm0, %v32_v8  ;;  %v645_v26 = vor.u32 %v753_v24, %v644_v23  ;;  %v582_v27 = vld [vmem:[%s1124_s3 + $0x68] sm:$0xf0]  ;;  %v752_v28 = vld [vmem:[%s1124_s3 + $0xe4] sm:$0xf]  ;;  %v572_v31 = vld [vmem:[%s1124_s3 + $0x50] sm:$0xf] }
   0x8   :  { %v646_v29 = vld [vmem:[%s1124_s3 + $0xe8] sm:$0xf0]  ;;  %529 = vmatmul.msk.bf16.vlgmr.msra.gmra.mxu1 %vm51_vm0, %v32_v8  ;;  %309 = vmatpush.bf16.msrb.mxu0 %v593_v17  ;;  %v585_v30 = vor.u32 %v736_v25, %v582_v27  ;;  %v735_v32 = vld [vmem:[%s1124_s3 + $0x54] sm:$0xf0]  ;;  %v636_v33 = vld [vmem:[%s1124_s3 + $0xd0] sm:$0xf] }
   0x9   :  { %322 = vmatpush.bf16.msrb.mxu1 %v657_v21  ;;  %v649_v34 = vor.u32 %v752_v28, %v646_v29  ;;  %v751_v35 = vld [vmem:[%s1124_s3 + $0xd4] sm:$0xf0]  ;;  %v734_v36 = vld [vmem:[%s1124_s3 + $0x54] sm:$0xf]  ;;  %v574_v37 = vld [vmem:[%s1124_s3 + $0x58] sm:$0xf0]  ;;  %v573_v38 = vor.u32 %v735_v32, %v572_v31 }
   0xa   :  { %284 = vmatpush.bf16.msra.mxu2 %v581_v22  ;;  %v637_v39 = vor.u32 %v751_v35, %v636_v33  ;;  %v750_v40 = vld [vmem:[%s1124_s3 + $0xd4] sm:$0xf]  ;;  %v638_v41 = vld [vmem:[%s1124_s3 + $0xd8] sm:$0xf0]  ;;  %v564_v42 = vld [vmem:[%s1124_s3 + $0x40] sm:$0xf]  ;;  %v577_v46 = vor.u32 %v734_v36, %v574_v37 }
   0xb   :  { %297 = vmatpush.bf16.msra.mxu3 %v645_v26  ;;  %v733_v43 = vld [vmem:[%s1124_s3 + $0x44] sm:$0xf0]  ;;  %v628_v44 = vld [vmem:[%s1124_s3 + $0xc0] sm:$0xf]  ;;  %v641_v47 = vor.u32 %v750_v40, %v638_v41  ;;  %v732_v48 = vld [vmem:[%s1124_s3 + $0x44] sm:$0xf] }
   0xc   :  { %v749_v45 = vld [vmem:[%s1124_s3 + $0xc4] sm:$0xf0]  ;;  %310 = vmatpush.bf16.msrb.mxu0 %v585_v30  ;;  %v566_v49 = vld [vmem:[%s1124_s3 + $0x48] sm:$0xf0]  ;;  %v565_v50 = vor.u32 %v733_v43, %v564_v42  ;;  %v748_v52 = vld [vmem:[%s1124_s3 + $0xc4] sm:$0xf] }
   0xd   :  { %323 = vmatpush.bf16.msrb.mxu1 %v649_v34  ;;  %v629_v51 = vor.u32 %v749_v45, %v628_v44  ;;  %v630_v53 = vld [vmem:[%s1124_s3 + $0xc8] sm:$0xf0]  ;;  %v556_v54 = vld [vmem:[%s1124_s3 + $0x30] sm:$0xf]  ;;  %v731_v55 = vld [vmem:[%s1124_s3 + $0x34] sm:$0xf0]  ;;  %v569_v58 = vor.u32 %v732_v48, %v566_v49 }
   0xe   :  { %285 = vmatpush.bf16.msra.mxu2 %v573_v38  ;;  %v620_v56 = vld [vmem:[%s1124_s3 + $0xb0] sm:$0xf]  ;;  %v747_v57 = vld [vmem:[%s1124_s3 + $0xb4] sm:$0xf0]  ;;  %v730_v59 = vld [vmem:[%s1124_s3 + $0x34] sm:$0xf]  ;;  %v633_v60 = vor.u32 %v748_v52, %v630_v53  ;;  %v557_v0 = vor.u32 %v731_v55, %v556_v54 }
   0xf   :  { %298 = vmatpush.bf16.msra.mxu3 %v637_v39  ;;  %v558_v61 = vld [vmem:[%s1124_s3 + $0x38] sm:$0xf0]  ;;  %v746_v62 = vld [vmem:[%s1124_s3 + $0xb4] sm:$0xf]  ;;  %v621_v1 = vor.u32 %v747_v57, %v620_v56  ;;  %v548_v2 = vld [vmem:[%s1124_s3 + $0x20] sm:$0xf] }
  0x10   :  { %311 = vmatpush.bf16.msrb.mxu0 %v577_v46  ;;  %v622_v63 = vld [vmem:[%s1124_s3 + $0xb8] sm:$0xf0]  ;;  %v729_v3 = vld [vmem:[%s1124_s3 + $0x24] sm:$0xf0]  ;;  %v612_v4 = vld [vmem:[%s1124_s3 + $0xa0] sm:$0xf] }
  0x11   :  { %324 = vmatpush.bf16.msrb.mxu1 %v641_v47  ;;  %v745_v5 = vld [vmem:[%s1124_s3 + $0xa4] sm:$0xf0] }
  0x12   :  { %286 = vmatpush.bf16.msra.mxu2 %v565_v50 }
  0x13   :  { %299 = vmatpush.bf16.msra.mxu3 %v629_v51 }
  0x14   :  { %13 = vsyncpa [#allocation3], 0  ;;  %312 = vmatpush.bf16.msrb.mxu0 %v569_v58  ;;  %v561_v6 = vor.u32 %v730_v59, %v558_v61  ;;  %v625_v7 = vor.u32 %v746_v62, %v622_v63  ;;  %v728_v8 = vld [vmem:[%s1124_s3 + $0x24] sm:$0xf]  ;;  %v550_v9 = vld [vmem:[%s1124_s3 + $0x28] sm:$0xf0]  ;;  %v549_v10 = vor.u32 %v729_v3, %v548_v2  ;;  %v613_v11 = vor.u32 %v745_v5, %v612_v4 }
  0x15   :  { %325 = vmatpush.bf16.msrb.mxu1 %v633_v60  ;;  %v744_v12 = vld [vmem:[%s1124_s3 + $0xa4] sm:$0xf]  ;;  %v614_v13 = vld [vmem:[%s1124_s3 + $0xa8] sm:$0xf0]  ;;  %v553_v14 = vor.u32 %v728_v8, %v550_v9  ;;  %v540_v16 = vld [vmem:[%s1124_s3 + $0x10] sm:$0xf] }
  0x16   :  { %287 = vmatpush.bf16.msra.mxu2 %v557_v0  ;;  %v617_v15 = vor.u32 %v744_v12, %v614_v13  ;;  %v727_v17 = vld [vmem:[%s1124_s3 + $0x14] sm:$0xf0]  ;;  %v604_v18 = vld [vmem:[%s1124_s3 + $0x90] sm:$0xf]  ;;  %v726_v21 = vld [vmem:[%s1124_s3 + $0x14] sm:$0xf] }
  0x17   :  { %300 = vmatpush.bf16.msra.mxu3 %v621_v1  ;;  %v541_v19 = vor.u32 %v727_v17, %v540_v16  ;;  %v743_v20 = vld [vmem:[%s1124_s3 + $0x94] sm:$0xf0]  ;;  %v542_v22 = vld [vmem:[%s1124_s3 + $0x18] sm:$0xf0]  ;;  %v742_v25 = vld [vmem:[%s1124_s3 + $0x94] sm:$0xf] }
  0x18   :  { %313 = vmatpush.bf16.msrb.mxu0 %v561_v6  ;;  %v605_v23 = vor.u32 %v743_v20, %v604_v18  ;;  %v545_v24 = vor.u32 %v726_v21, %v542_v22  ;;  %v606_v26 = vld [vmem:[%s1124_s3 + $0x98] sm:$0xf0]  ;;  %v532_v28 = vld [vmem:[%s1124_s3] sm:$0xf]  ;;  %v725_v29 = vld [vmem:[%s1124_s3 + $0x4] sm:$0xf0] }
  0x19   :  { %326 = vmatpush.bf16.msrb.mxu1 %v625_v7  ;;  %v609_v27 = vor.u32 %v742_v25, %v606_v26  ;;  %v596_v30 = vld [vmem:[%s1124_s3 + $0x80] sm:$0xf]  ;;  %v533_v31 = vor.u32 %v725_v29, %v532_v28  ;;  %v741_v32 = vld [vmem:[%s1124_s3 + $0x84] sm:$0xf0]  ;;  %v724_v33 = vld [vmem:[%s1124_s3 + $0x4] sm:$0xf] }
  0x1a   :  { %288 = vmatpush.bf16.msra.mxu2 %v549_v10  ;;  %v534_v34 = vld [vmem:[%s1124_s3 + $0x8] sm:$0xf0]  ;;  %v597_v35 = vor.u32 %v741_v32, %v596_v30  ;;  %v740_v37 = vld [vmem:[%s1124_s3 + $0x84] sm:$0xf]  ;;  %v771_v40 = vld [vmem:[%s1126_s5 + $0x78] sm:$0xff]  ;;  %s803_s10 = smov [#allocation2]  }
  0x1b   :  { %301 = vmatpush.bf16.msra.mxu3 %v613_v11  ;;  %v537_v36 = vor.u32 %v724_v33, %v534_v34  ;;  %v598_v38 = vld [vmem:[%s1124_s3 + $0x88] sm:$0xf0]  ;;  %v763_v41 = vld [vmem:[%s1126_s5 + $0x38] sm:$0xff]  ;;  %v770_v42 = vld [vmem:[%s1126_s5 + $0x70] sm:$0xff]  ;;  %s509_s11 = sshll.u32 %s803_s10, 4  ;;  %s511_s14 = sshll.u32 %s1129_s8, 4  ;;  %s510_s11 = int_to_ptr.vmem [resolvable:$true] %s509_s11  ;;  %s512_s14 = int_to_ptr.hbm [resolvable:$true] %s511_s14 }
  0x1c   :  { %314 = vmatpush.bf16.msrb.mxu0 %v553_v14  ;;  %v601_v39 = vor.u32 %v740_v37, %v598_v38  ;;  %v762_v43 = vld [vmem:[%s1126_s5 + $0x30] sm:$0xff]  ;;  %v769_v44 = vld [vmem:[%s1126_s5 + $0x68] sm:$0xff]  ;;  %v768_v46 = vld [vmem:[%s1126_s5 + $0x60] sm:$0xff] }
  0x1d   :  { %327 = vmatpush.bf16.msrb.mxu1 %v617_v15  ;;  %v761_v45 = vld [vmem:[%s1126_s5 + $0x28] sm:$0xff]  ;;  %v760_v47 = vld [vmem:[%s1126_s5 + $0x20] sm:$0xff]  ;;  %v767_v48 = vld [vmem:[%s1126_s5 + $0x58] sm:$0xff] }
  0x1e   :  { %289 = vmatpush.bf16.msra.mxu2 %v541_v19  ;;  %v35_v49 = vld [vmem:[%s1123_s2] sm:$0x3]  ;;  %v766_v50 = vld [vmem:[%s1126_s5 + $0x50] sm:$0xff]  ;;  %v759_v63 = vld [vmem:[%s1126_s5 + $0x18] sm:$0xff] }
  0x1f   :  { %302 = vmatpush.bf16.msra.mxu3 %v605_v23  ;;  %v37_v51 = vperm.slane %v35_v49, 0  ;;  %v38_v52 = vperm.slane %v35_v49, 1  ;;  %v765_v0 = vld [vmem:[%s1126_s5 + $0x48] sm:$0xff]  ;;  %v758_v1 = vld [vmem:[%s1126_s5 + $0x10] sm:$0xff]  ;;  %v764_v2 = vld [vmem:[%s1126_s5 + $0x40] sm:$0xff] }
  0x20   :  { %315 = vmatpush.bf16.msrb.mxu0 %v545_v24  ;;  %v757_v3 = vld [vmem:[%s1126_s5 + $0x8] sm:$0xff]  ;;  %v756_v4 = vld [vmem:[%s1126_s5] sm:$0xff] }
  0x21   :  { %328 = vmatpush.bf16.msrb.mxu1 %v609_v27  ;;  %v117_v5 = vld [vmem:[%s1125_s4] sm:$0x3] }
  0x22   :  { %290 = vmatpush.bf16.msra.mxu2 %v533_v31  ;;  %v120_v6 = vperm.slane %v117_v5, 1  ;;  %v119_v11 = vperm.slane %v117_v5, 0  ;;  %v773_v25 = vld [vmem:[%s1127_s6] ss:$0 sm:$0xff] }
  0x23   :  { %303 = vmatpush.bf16.msra.mxu3 %v597_v35  ;;  %v774_v31 = vld [vmem:[%s1128_s7] ss:$0 sm:$0xff] }
  0x24   :  { %316 = vmatpush.bf16.msrb.mxu0 %v537_v36 }
  0x25   :  { %329 = vmatpush.bf16.msrb.mxu1 %v601_v39 }
  0x26   :  { %471 = vmatpush.bf16.msrb.mxu2 %v763_v41 }
  0x27   :  { %484 = vmatpush.bf16.msrb.mxu3 %v771_v40 }
  0x2a   :  { %472 = vmatpush.bf16.msrb.mxu2 %v762_v43 }
  0x2b   :  { %485 = vmatpush.bf16.msrb.mxu3 %v770_v42 }
  0x2e   :  { %473 = vmatpush.bf16.msrb.mxu2 %v761_v45 }
  0x2f   :  { %486 = vmatpush.bf16.msrb.mxu3 %v769_v44 }
  0x32   :  { %474 = vmatpush.bf16.msrb.mxu2 %v760_v47 }
  0x33   :  { %487 = vmatpush.bf16.msrb.mxu3 %v768_v46 }
  0x36   :  { %475 = vmatpush.bf16.msrb.mxu2 %v759_v63 }
  0x37   :  { %488 = vmatpush.bf16.msrb.mxu3 %v767_v48 }
  0x3a   :  { %476 = vmatpush.bf16.msrb.mxu2 %v758_v1 }
  0x3b   :  { %489 = vmatpush.bf16.msrb.mxu3 %v766_v50 }
  0x3e   :  { %477 = vmatpush.bf16.msrb.mxu2 %v757_v3 }
  0x3f   :  { %490 = vmatpush.bf16.msrb.mxu3 %v765_v0 }
  0x42   :  { %478 = vmatpush.bf16.msrb.mxu2 %v756_v4 }
  0x43   :  { %491 = vmatpush.bf16.msrb.mxu3 %v764_v2 }
  0x84   :  { %v64_v53 = vpop.f32.mrf.mxu0 }
  0x85   :  { %v65_v54 = vadd.f32 %v64_v53, %v37_v51  ;;  %v77_v55 = vpop.f32.mrf.mxu1 }
  0x86   :  { %v78_v56 = vadd.f32 %v77_v55, %v38_v52 }
  0x87   :  { %v81_v57 = vmax.f32 %v65_v54, 0.0 }
  0x88   :  { %v82_v58 = vmax.f32 %v78_v56, 0.0 }
  0x89   :  { %v83_v59 = vpack.c.bf16 %v81_v57, %v81_v57 }
  0x8a   :  { %v84_v60 = vpack.c.bf16 %v82_v58, %v82_v58 }
  0x8b   :  { %291 = vmatmul.bf16.vlgmr.msra.gmra.mxu2 %v83_v59  ;;  %317 = vmatmul.bf16.vlgmr.msrb.gmra.mxu0 %v83_v59 }
  0x8c   :  { %304 = vmatmul.bf16.vlgmr.msra.gmra.mxu3 %v84_v60  ;;  %330 = vmatmul.bf16.vlgmr.msrb.gmra.mxu1 %v84_v60  ;;  %v66_v61 = vpop.f32.mrf.mxu0 }
  0x8d   :  { %v79_v62 = vpop.f32.mrf.mxu1 }
 0x108   :  { %v318_v7 = vpop.f32.mrf.mxu0 }
 0x109   :  { %v319_v8 = vadd.f32 %v318_v7, %v120_v6  ;;  %v331_v9 = vpop.f32.mrf.mxu1 }
 0x10b   :  { %v332_v10 = vadd.f32 %v331_v9, %v319_v8 }
 0x10d   :  { %v336_v12 = vmax.f32 %v332_v10, 0.0 }
 0x10e   :  { %v292_v13 = vpop.f32.mrf.mxu2 }
 0x10f   :  { %v338_v14 = vpack.c.bf16 %v336_v12, %v336_v12  ;;  %v293_v15 = vadd.f32 %v292_v13, %v119_v11  ;;  %v305_v16 = vpop.f32.mrf.mxu3 }
 0x110   :  { %v320_v17 = vpop.f32.mrf.mxu0 }
 0x111   :  { %v306_v18 = vadd.f32 %v305_v16, %v293_v15  ;;  %v333_v19 = vpop.f32.mrf.mxu1  ;;  %492 = vmatmul.bf16.vlgmr.msrb.gmra.mxu3 %v338_v14 }
 0x113   :  { %v335_v20 = vmax.f32 %v306_v18, 0.0 }
 0x115   :  { %v337_v21 = vpack.c.bf16 %v335_v20, %v335_v20 }
 0x116   :  { %v294_v22 = vpop.f32.mrf.mxu2 }
 0x117   :  { %v307_v23 = vpop.f32.mrf.mxu3  ;;  %479 = vmatmul.bf16.vlgmr.msrb.gmra.mxu2 %v337_v21 }
 0x194   :  { %v493_v24 = vpop.f32.mrf.mxu3 }
 0x19a   :  { %v480_v26 = vpop.f32.mrf.mxu2 }
 0x19b   :  { %v481_v27 = vadd.f32 %v773_v25, %v480_v26 }
 0x19c   :  { %v495_v28 = vpop.f32.mrf.mxu3 }
 0x19d   :  { %v494_v29 = vadd.f32 %v493_v24, %v481_v27 }
 0x19f   :  { %775 = vtanh.f32 %v494_v29 }
 0x1a2   :  { %v482_v30 = vpop.f32.mrf.mxu2 }
 0x1a5   :  { %v776_v32 = vpop.eup %775 }
 0x1a6   :  { %v502_v33 = vmul.f32 %v776_v32, %v774_v31 }
 0x1a8   :  { %503 = vst [vmem:[#allocation2] sm:$0xff] %v502_v33 }
 0x1a9   :  { %514 = dma.vmem_to_hbm [thread:$0]  %s510_s11, 128, %s512_s14, [#allocation3]  }
 0x1aa   :  { %801 = dma.done.wait [#allocation3], 128  }
 0x1ab   :  { %802 = vsyncadd [#allocation3], 4294967168 }
 0x1ac   :  { %519 = vsyncpa [#allocation3], 1 }

</bundles_post_ra>
